<compile_context>
chip_gen: v7x
topology: tpu7x:2x2x1
jax: 0.10.0
libtpu: 0.0.40
codegen_flags: <defaults>
</compile_context>

<pallas_src>
import functools

import jax
import jax.numpy as jnp
from jax import lax
from jax.experimental import pallas as pl
from jax.experimental.pallas import tpu as pltpu


def _rot(x, s):
    """Cyclic roll of the minor axis by a static shift s (jnp.roll semantics)."""
    if s == 0:
        return x
    return pltpu.roll(x, shift=s, axis=x.ndim - 1)


def _chunk_roll(x, shift, chunk, pos_in_chunk):
    """Roll each contiguous `chunk`-long group of the minor axis by `shift`.

    pos_in_chunk: (1, n) int32 lane position modulo `chunk`; broadcast over
    rows by jnp.where.  Implemented as two XLU rotations + one VPU select.
    The `lo` rotate uses a whole-axis amount; it is only consumed where
    pos_in_chunk < s, positions which never wrap across the full axis.
    """
    n = x.shape[-1]
    s = shift % chunk                 # Python mod: static, non-negative
    if s == 0:
        return x
    if chunk == n:
        return _rot(x, s)
    hi = _rot(x, s)                   # correct where pos_in_chunk >= s
    lo = _rot(x, (s - chunk) % n)     # correct where pos_in_chunk <  s
    return jnp.where(pos_in_chunk >= s, hi, lo)


def _shift_kernel(x_ref, o_ref, *, dims, shifts, d_in_block):
    """Roll one (rows, n) block.

    d_in_block=False: block minor axis is H*W; the D roll was folded into the
      BlockSpec index_map, so only the H roll (whole-axis rotate) and the
      W roll (chunked rotate + select) are done in-register.
    d_in_block=True : block minor axis is D*H*W; all three rolls in-register.
    """
    D, H, W = dims
    sd, sh, sw = shifts
    x = x_ref[...]
    n = x.shape[-1]
    # Lane-width index only; unused pieces are DCE'd when a shift is 0.
    lane = lax.broadcasted_iota(jnp.int32, (1, n), 1)
    if d_in_block:
        x = _rot(x, (sd * H * W) % n)               # D roll: whole-axis rotate
        pos_hw = lane % (H * W)
        x = _chunk_roll(x, sh * W, H * W, pos_hw)   # H roll
        pos_w = pos_hw % W                          # derive, no second full mod
        x = _chunk_roll(x, sw, W, pos_w)            # W roll
    else:
        x = _rot(x, (sh * W) % n)                   # H roll: whole-axis rotate
        pos_w = lane % W
        x = _chunk_roll(x, sw, W, pos_w)            # W roll
    o_ref[...] = x


def _rows_per_block(bc, row_bytes, sub, target_bytes, d_blocks):
    """Rows (B*C slabs) per block: ~target_bytes, multiple of `sub` sublanes,
    and at least 2 total grid steps so the megacore split has work."""
    if bc <= sub:
        return int(bc)
    rows = max(1, target_bytes // max(row_bytes, 1))
    if d_blocks < 2 and bc >= 2 * sub:
        rows = min(rows, bc // 2)     # guarantee >= 2 grid steps (v7x 2 TCs)
    rows = min(rows, bc)
    if rows < bc:
        rows = max(sub, (rows // sub) * sub)
        rows = min(rows, bc)
    return int(rows)


def window_shift_3d(x, kernel_size, reverse=False, *, target_block_bytes=4 << 20):
    """Pallas implementation of WindowShift3d.forward.

    x: (B, C, D, H, W) array.  kernel_size: (kd, kh, kw) static ints.
    reverse: matches the `reversed` flag of the PyTorch module.
    """
    kd, kh, kw = kernel_size
    if not reverse:
        shifts = (-kd // 2, -kh // 2, -kw // 2)   # matches self.shift_size
    else:
        shifts = (kd // 2, kh // 2, kw // 2)      # matches self.shift_size_rev

    B, C, D, H, W = x.shape
    bc = B * C
    hw = H * W
    n = D * hw
    itemsize = jnp.dtype(x.dtype).itemsize
    sub = max(8, 32 // itemsize)     # sublane granularity: f32->8, bf16->16, i8->32

    # Primary layout: (bc, D*hw) with block minor = hw and a grid axis over D
    # (D roll folded into the input index_map).  Requires hw lane-dense
    # (multiple of 128) unless D == 1 (then hw already is the full minor axis).
    d_grid = (hw % 128 == 0) or (D == 1)
    block_n = hw if d_grid else n
    d_blocks = D if d_grid else 1

    xf = x.reshape(bc, n)            # contiguous (free) reshape

    row_bytes = block_n * itemsize
    rows = _rows_per_block(bc, row_bytes, sub, target_block_bytes, d_blocks)
    grid = (pl.cdiv(bc, rows), d_blocks)

    sd = shifts[0]
    d_off = (-sd) % D                # static, non-negative

    if d_grid:
        def in_index(i, d):
            # output block d reads source block (d - sd) % D == (d + d_off) % D
            return (i, (d + d_off) % D)
    else:
        def in_index(i, d):
            return (i, 0)

    def out_index(i, d):
        return (i, d)

    block_bytes = rows * row_bytes
    # 2x double-buffered in + out plus rotation/select temporaries must fit;
    # >= 32 MiB beats v5e's 16 MiB scoped default, <= 48 MiB stays inside
    # v7x's 64 MiB physical VMEM.
    vmem_limit = int(max(32 << 20, min(12 * block_bytes, 48 << 20)))

    out = pl.pallas_call(
        functools.partial(_shift_kernel, dims=(D, H, W), shifts=shifts,
                          d_in_block=not d_grid),
        out_shape=jax.ShapeDtypeStruct((bc, n), x.dtype),
        grid=grid,
        in_specs=[pl.BlockSpec((rows, block_n), in_index)],
        out_specs=pl.BlockSpec((rows, block_n), out_index),
        compiler_params=pltpu.CompilerParams(
            dimension_semantics=("parallel", "parallel"),
            vmem_limit_bytes=vmem_limit,
        ),
        cost_estimate=pl.CostEstimate(
            flops=0,
            transcendentals=0,
            bytes_accessed=2 * x.size * itemsize,
        ),
    )(xf)
    return out.reshape(B, C, D, H, W)


def _reference(x, kernel_size, reverse=False):
    kd, kh, kw = kernel_size
    if not reverse:
        shifts = (-kd // 2, -kh // 2, -kw // 2)
    else:
        shifts = (kd // 2, kh // 2, kw // 2)
    return jnp.roll(x, shift=shifts, axis=(2, 3, 4))


if __name__ == "__main__":
    key = jax.random.PRNGKey(0)

    # Primary path: hw = 256 (lane-dense) -> D roll folded into index_map.
    B, C, D, H, W = 2, 4, 8, 16, 16
    x = jax.random.normal(key, (B, C, D, H, W), dtype=jnp.float32)

    # Even and odd kernel sizes (odd exercises the floor-division asymmetry).
    for ks in [(2, 4, 4), (3, 3, 5)]:
        for rev in (False, True):
            y = jax.block_until_ready(window_shift_3d(x, ks, reverse=rev))
            assert y.shape == x.shape and y.dtype == x.dtype
            assert jnp.array_equal(y, _reference(x, ks, reverse=rev)), \
                f"roll mismatch (primary path) ks={ks} reverse={rev}"

    # Fallback path: hw = 16 (not a multiple of 128) -> flat (rows, D*H*W)
    # blocks with all three rolls in-register (n = 128 here).
    x2 = jax.random.normal(jax.random.PRNGKey(0), (2, 4, 8, 4, 4),
                           dtype=jnp.float32)
    for ks in [(2, 4, 4), (3, 3, 3)]:
        for rev in (False, True):
            y2 = jax.block_until_ready(window_shift_3d(x2, ks, reverse=rev))
            assert jnp.array_equal(y2, _reference(x2, ks, reverse=rev)), \
                f"roll mismatch (fallback path) ks={ks} reverse={rev}"

    print("KERNEL_OK")
</pallas_src>

<mosaic_0001>
module attributes {stable_mosaic.version = 11 : i64} {
  func.func @_shift_kernel(%arg0: i32, %arg1: i32, %arg2: memref<8x256xf32, #tpu.memory_space<vmem>>, %arg3: memref<8x256xf32, #tpu.memory_space<vmem>>) attributes {dimension_semantics = [#tpu.dimension_semantics<parallel>, #tpu.dimension_semantics<parallel>], iteration_bounds = array<i64: 1, 8>, scalar_prefetch = 0 : i64, scratch_operands = 0 : i64, tpu.core_type = #tpu.core_type<tc>, window_params = [{transform_indices = @transform_0, window_bounds = array<i64: 8, 256>}, {transform_indices = @transform_1, window_bounds = array<i64: 8, 256>}]} {
    %c0 = arith.constant 0 : index
    %c0_0 = arith.constant 0 : index
    %0 = vector.load %arg2[%c0, %c0_0] : memref<8x256xf32, #tpu.memory_space<vmem>>, vector<8x256xf32>
    %1 = tpu.iota {dimensions = array<i32: 1>} : vector<1x256xi32>
    %c224_i32 = arith.constant 224 : i32
    %2 = tpu.dynamic_rotate %0 by %c224_i32 dim 1 : vector<8x256xf32>, i32 -> vector<8x256xf32>
    %c16_i32 = arith.constant 16 : i32
    %c0_i32 = arith.constant 0 : i32
    %3 = arith.cmpi eq, %c16_i32, %c0_i32 : i32
    %c1_i32 = arith.constant 1 : i32
    %4 = arith.select %3, %c1_i32, %c16_i32 : i32
    %5 = vector.broadcast %4 : i32 to vector<1x256xi32>
    %6 = arith.remsi %1, %5 : vector<1x256xi32>
    %c0_i32_1 = arith.constant 0 : i32
    %7 = vector.broadcast %c0_i32_1 : i32 to vector<1x256xi32>
    %8 = arith.cmpi ne, %6, %7 : vector<1x256xi32>
    %c0_i32_2 = arith.constant 0 : i32
    %9 = vector.broadcast %c0_i32_2 : i32 to vector<1x256xi32>
    %10 = arith.cmpi slt, %6, %9 : vector<1x256xi32>
    %c0_i32_3 = arith.constant 0 : i32
    %11 = arith.cmpi slt, %4, %c0_i32_3 : i32
    %12 = vector.broadcast %11 : i1 to vector<1x256xi1>
    %13 = vector.broadcast %12 : vector<1x256xi1> to vector<1x256xi1>
    %14 = arith.xori %10, %13 : vector<1x256xi1>
    %15 = arith.andi %14, %8 : vector<1x256xi1>
    %16 = vector.broadcast %4 : i32 to vector<1x256xi32>
    %17 = arith.addi %6, %16 : vector<1x256xi32>
    %18 = arith.select %15, %17, %6 : vector<1x256xi1>, vector<1x256xi32>
    %c14_i32 = arith.constant 14 : i32
    %19 = tpu.dynamic_rotate %2 by %c14_i32 dim 1 : vector<8x256xf32>, i32 -> vector<8x256xf32>
    %c254_i32 = arith.constant 254 : i32
    %20 = tpu.dynamic_rotate %2 by %c254_i32 dim 1 : vector<8x256xf32>, i32 -> vector<8x256xf32>
    %c14_i32_4 = arith.constant 14 : i32
    %21 = vector.broadcast %c14_i32_4 : i32 to vector<1x256xi32>
    %22 = arith.cmpi sge, %18, %21 : vector<1x256xi32>
    %23 = vector.shape_cast %22 : vector<1x256xi1> to vector<1x256xi1>
    %24 = vector.broadcast %23 : vector<1x256xi1> to vector<8x256xi1>
    %25 = arith.select %24, %19, %20 : vector<8x256xi1>, vector<8x256xf32>
    %c0_5 = arith.constant 0 : index
    %c0_6 = arith.constant 0 : index
    %26 = vector.load %arg3[%c0_5, %c0_6] : memref<8x256xf32, #tpu.memory_space<vmem>>, vector<8x256xf32>
    tpu.vector_store %arg3[%c0_5, %c0_6], %25 {strides = array<i32>} : memref<8x256xf32, #tpu.memory_space<vmem>>, vector<8x256xf32>,
    return
  }
  func.func @transform_0(%arg0: i32, %arg1: i32) -> (i32, i32) {
    %c1_i32 = arith.constant 1 : i32
    %0 = arith.addi %arg1, %c1_i32 : i32
    %c8_i32 = arith.constant 8 : i32
    %c0_i32 = arith.constant 0 : i32
    %1 = arith.cmpi eq, %c8_i32, %c0_i32 : i32
    %c1_i32_0 = arith.constant 1 : i32
    %2 = arith.select %1, %c1_i32_0, %c8_i32 : i32
    %3 = arith.remsi %0, %2 : i32
    %c0_i32_1 = arith.constant 0 : i32
    %4 = arith.cmpi ne, %3, %c0_i32_1 : i32
    %c0_i32_2 = arith.constant 0 : i32
    %5 = arith.cmpi slt, %3, %c0_i32_2 : i32
    %c0_i32_3 = arith.constant 0 : i32
    %6 = arith.cmpi slt, %2, %c0_i32_3 : i32
    %7 = arith.xori %5, %6 : i1
    %8 = arith.andi %7, %4 : i1
    %9 = arith.addi %3, %2 : i32
    %10 = arith.select %8, %9, %3 : i32
    %c0_i32_4 = arith.constant 0 : i32
    return %arg0, %10 : i32, i32
  }
  func.func @transform_1(%arg0: i32, %arg1: i32) -> (i32, i32) {
    %c0_i32 = arith.constant 0 : i32
    return %arg0, %arg1 : i32, i32
  }
}

</mosaic_0001>

<bundles_post_ra>
// kernel: tpu_custom_call.1
= control target key start
LH: loop header
LB: loop body
LE: loop exit
PB: predicated region body
PF: predicated region fallthrough
CT: control target
= control target key end

     0   :  { %6 = vsyncpa [#allocation3], 0  ;;  %s837_s0 = inlined_call_operand.hbm [shape: f32[8,2048], index: 0, kind: input, shape index: {}]   ;;  %s838_s1 = inlined_call_operand.hbm [shape: f32[8,2048], index: 1, kind: output, shape index: {}]  }
   0x1   :  { %8 = vsyncpa [#allocation3 + $0x1], 0 }
   0x2   :  { %9 = vsyncpa [#allocation4], 0 }
   0x3   :  { %11 = vsyncpa [#allocation4 + $0x1], 0  ;;  %s634_s6 = smov 0   ;;  %s636_s7 = smov 0  }
   0x4   :  { %s638_s8 = smov 0   ;;  %s640_s9 = smov 0  }
   0x5   :  { %s642_s10 = smov 0   ;;  %s644_s11 = smov 0  }
   0x6   :  { %s646_s12 = smov 0   ;;  %s648_s13 = smov 0  }
   0x7   :  { %s650_s14 = smov 0  }
   0x8 LB: > { %s366_s15 = sadd.s32 4294967295, %s617_s14   ;;  %s367_s16 = sadd.s32 4294967294, %s617_s14   ;;  %s617_s14 = sphi %s650_s14, %s17_s14   ;;  %s613_s13 = sphi %s648_s13, %s856_s13   ;;  %s609_s12 = sphi %s646_s12, %s855_s12   ;;  %s605_s11 = sphi %s644_s11, %s854_s11   ;;  %s601_s10 = sphi %s642_s10, %s853_s10   ;;  %s597_s9 = sphi %s640_s9, %s852_s9   ;;  %s593_s8 = sphi %s638_s8, %s851_s8   ;;  %s589_s7 = sphi %s636_s7, %s850_s7   ;;  %s585_s6 = sphi %s634_s6, %s849_s6  }
   0x9   : > { %s26_s17 = sadd.s32 1, %s613_s13  ;;  %s64_s18 = sadd.s32 1, %s605_s11 }
   0xa   : > { %p27_p0 = scmp.ge.s32.totalorder %s26_s17, 8  ;;  %s35_s19 = ssub.s32 0, %s26_s17 }
   0xb   : > { %p71_p1 = scmp.ne.s32.totalorder %s605_s11, %s601_s10  ;;  %s368_s21 = smin.u32 %s35_s19, %s26_s17 }
   0xc   : > { %s683_s20 = scalar_select %p27_p0, 0, %s26_s17  }
   0xd   : > { %p72_p2 = scmp.eq.s32.totalorder %s617_s14, 0  ;;  %s37_s22 = sand.u32 7, %s368_s21  }
   0xe   : > { %s46_s23 = sadd.s32 1, %s683_s20  ;;  %p370_p4 = scmp.lt.s32.totalorder %s37_s22, 0 }
   0xf   : > { %s48_s24 = ssub.s32 0, %s46_s23  ;;  %p687_p3 = por %p72_p2, %p71_p1 }
  0x10   : > { %s44_s26 = sadd.s32 8, %s37_s22  ;;  %s371_s27 = smin.u32 %s48_s24, %s46_s23 }
  0x11   : > { %p77_p5 = scmp.ne.s32.totalorder %s601_s10, %s597_s9  ;;  %s858_s26 = smov (!%p370_p4, %s44_s26), %s37_s22 }
  0x12   : > { %s50_s28 = sand.u32 7, %s371_s27   ;;  %p78_p6 = scmp.eq.s32.totalorder %s366_s15, 0 }
  0x13   : > { %s88_s29 = ssub.s32 %s613_s13, %s683_s20  ;;  %p373_p9 = scmp.lt.s32.totalorder %s50_s28, 0 }
  0x14   : > { %p696_p7 = por %p78_p6, %p77_p5  ;;  %p90_p8 = scmp.eq.s32.totalorder %s88_s29, 0 }
  0x15   : > { %s57_s2 = sadd.s32 8, %s50_s28  ;;  %s92_s3 = sadd.s32 1, %s593_s8 }
  0x16   : > { %p102_p10 = scmp.ne.s32.totalorder %s593_s8, %s589_s7  ;;  %s860_s2 = smov (!%p373_p9, %s57_s2), %s50_s28 }
  0x17   : > { %s704_s4 = scalar_select %p90_p8, %s593_s8, %s92_s3  }
  0x18   : > { %s60_s5 = ssub.s32 %s858_s26, %s860_s2  ;;  %p103_p11 = scmp.eq.s32.totalorder %s366_s15, 7 }
  0x19   : > { %p62_p12 = scmp.eq.s32.totalorder %s60_s5, 0  ;;  %p108_p13 = scmp.ne.s32.totalorder %s589_s7, %s585_s6 }
  0x1a   : > { %p710_p0 = por %p103_p11, %p102_p10  ;;  %p109_p1 = scmp.eq.s32.totalorder %s367_s16, 7 }
  0x1b   : > { %s719_s17 = scalar_select %p62_p12, %s605_s11, %s64_s18  }
  0x1c   : > { %s842_s9 = scalar_select %p710_p0, 1, 0 }
  0x1d   : > { %p721_p2 = por %p109_p1, %p108_p13  ;;  %p404_p4 = scmp.lt.s32.totalorder %s617_s14, 8 }
  0x1e   : > { %s129_s21 = sand.u32 1, %s605_s11   ;;  %s390_s22 = sshll.u32 %s858_s26, 8 }
  0x1f   : > { %s843_s19 = scalar_select %p721_p2, 1, 0 }
  0x20   : > { %s376_s15 = sshll.u32 %s129_s21, 4  ;;  %s730_s27 = scalar_lea.hbm %s837_s0, %s390_s22 }
  0x21   : > { %s133_s16 = scalar_lea.vmem [#allocation2], %s376_s15  ;;  %p736_p5 = pnand %p404_p4, %p687_p3 }
  0x22   : > { %s156_s18 = sshll.u32 %s133_s16, 4  ;;  %s130_s26 = scalar_lea.sflag [#allocation3], %s129_s21  ;;  %s732_s18 = int_to_ptr.vmem [resolvable:$true] %s156_s18 }
  0x23   : > { %s481_s29 = scalar_lea.hbm %s730_s27, 256  ;;  %p483_p10 = pneg %p736_p5 }
  0x24   : > { %p482_p9 = scmp.ne.s32.totalorder %s730_s27, %s481_s29  ;;  %s486_s25 = scalar_lea.hbm %s837_s0, 2048 }
  0x25   : > { %p487_p3 = scmp.lt.u32.totalorder %s730_s27, %s837_s0  ;;  %p488_p13 = scmp.lt.u32.totalorder %s486_s25, %s481_s29 }
  0x26   : > { %p484_p11 = pnand %p483_p10, %p482_p9  ;;  %p490_p4 = scmp.lt.u32.totalorder %s481_s29, %s730_s27 }
  0x27   : > { %p489_p1 = por %p488_p13, %p487_p3 }
  0x28   : > { %p485_p12 = pneg %p484_p11 }
  0x29   : > { %p491_p6 = por %p490_p4, %p489_p1 }
  0x2b   : > { %p492_p8 = pnand %p491_p6, %p485_p12 }
  0x2d   : > { %495 = shalt.err (!%p492_p8)
}
  0x2e   : > { %s496_s21 = scalar_lea.vmem %s732_s18, 256  ;;  %s619_s22 = smov [#allocation2]  }
  0x2f   : > { %p497_p9 = scmp.ne.s32.totalorder %s732_s18, %s496_s21  ;;  %s501_s23 = sshll.u32 %s619_s22, 4  ;;  %s502_s23 = int_to_ptr.vmem [resolvable:$false] %s501_s23 }
  0x30   : > { %s503_s24 = scalar_lea.vmem %s502_s23, 512  ;;  %p504_p0 = scmp.lt.s32.totalorder %s732_s18, %s502_s23 }
  0x31   : > { %p499_p11 = pnand %p497_p9, %p483_p10  ;;  %p505_p3 = scmp.lt.s32.totalorder %s503_s24, %s496_s21 }
  0x33   : > { %p500_p2 = pneg %p499_p11  ;;  %p506_p13 = por %p505_p3, %p504_p0 }
  0x35   : > { %p507_p1 = pnand %p506_p13, %p500_p2 }
  0x37   : > { %510 = shalt.err (!%p507_p1)
}
  0x38   : > { %399 = dma.hbm_to_vmem [thread:$0]  (!%p736_p5), %s730_s27, 256, %s732_s18, %s130_s26  }
  0x39   : > { %p845_p6 = scmp.lt.s32.totalorder %s617_s14, 9  ;;  %p846_p8 = scmp.ge.s32.totalorder %s617_s14, 1 }
  0x3b   : > { %p162_p10 = pnand %p846_p8, %p845_p6 }
  0x3c   : > { %s167_s16 = sand.u32 (!%p162_p10), 1, %s601_s10  }
  0x3d   : > { %165 = sbr.rel (%p162_p10) target bundleno = 329 (0x149), region = 24  ;;  %s383_s29 = sshll.u32 (!%p162_p10), %s167_s16, 4 }
  0x3e   : > { %s168_s2 = scalar_lea.sflag (!%p162_p10), [#allocation3], %s167_s16  ;;  %s171_s3 = scalar_lea.vmem (!%p162_p10), [#allocation2], %s383_s29 }
  0x44   : > { %576 = dma.done.wait (%p696_p7), %s168_s2, 256  }
  0x45   : > { %578 = vsyncadd (%p696_p7), %s168_s2, 4294967040  ;;  %v205_v0 = vld [vmem:[%s171_s3] sm:$0xff]  ;;  %s620_s28 = smov 96   ;;  %v206_v1 = vld [vmem:[%s171_s3 + $0x8] sm:$0xff]  ;;  %v207_v2 = vlaneseq  ;;  %s621_s27 = smov 126  }
  0x46   : > { %210 = vrot.lane.b32.xlu0 %v205_v0, %s620_s28  ;;  %s622_s18 = smov 14   ;;  %s187_s30 = sand.u32 1, %s589_s7  }
  0x47   : > { %v208_v3 = vand.u32 127, %v207_v2  ;;  %s384_s26 = sshll.u32 %s187_s30, 4  ;;  %s391_s25 = sshll.u32 %s609_s12, 8 }
  0x48   : > { %s189_s5 = scalar_lea.vmem [#allocation5], %s384_s26  ;;  %s781_s23 = scalar_lea.hbm %s838_s1, %s391_s25 }
  0x49   : > { %vm214_vm0 = vcmp.lt.s32.totalorder %v208_v3, 96  ;;  %v209_v8 = vadd.s32 128, %v208_v3  ;;  %v221_v10 = vand.u32 15, %v208_v3  ;;  %vm245_vm1 = vcmp.lt.s32.totalorder %v208_v3, 14  ;;  %s282_s15 = sshll.u32 %s189_s5, 4  ;;  %s266_s12 = scalar_lea.sflag [#allocation4], %s187_s30  ;;  %s783_s15 = int_to_ptr.vmem [resolvable:$true] %s282_s15 }
  0x4a   : > { %212 = vrot.lane.b32.xlu0 %v206_v1, %s620_s28  ;;  %vm252_vm2 = vcmp.lt.s32.totalorder %v208_v3, 126  ;;  %s511_s24 = scalar_lea.vmem %s783_s15, 256  ;;  %p847_p0 = scmp.ne.s32.totalorder %s842_s9, 0 }
  0x4b   : > { %v228_v11 = vand.u32 15, %v209_v8  ;;  %vm255_vm3 = vcmp.ge.s32.totalorder %v221_v10, 14  ;;  %p512_p7 = scmp.ne.s32.totalorder %s783_s15, %s511_s24  ;;  %s623_s16 = smov [#allocation5]  }
  0x4c   : > { %s515_s29 = sshll.u32 %s623_s16, 4  ;;  %s516_s29 = int_to_ptr.vmem [resolvable:$false] %s515_s29 }
  0x4d   : > { %vm256_vm4 = vcmp.ge.s32.totalorder %v228_v11, 14  ;;  %p513_p2 = pnand %p512_p7, %p847_p0  ;;  %s517_s2 = scalar_lea.vmem %s516_s29, 512 }
  0x4e   : > { %p518_p12 = scmp.lt.s32.totalorder %s783_s15, %s516_s29  ;;  %p519_p4 = scmp.lt.s32.totalorder %s517_s2, %s511_s24 }
  0x4f   : > { %p514_p5 = pneg %p513_p2 }
  0x50   : > { %p520_p9 = por %p519_p4, %p518_p12 }
  0x52   : > { %p521_p11 = pnand %p520_p9, %p514_p5 }
  0xb8   : > { %v211_v4 = vpop.permute.xlu0 %210 }
  0xbc   : > { %v213_v5 = vpop.permute.xlu0 %212 }
  0xbd   : > { %v215_v6 = vsel %vm214_vm0, %v211_v4, %v213_v5  ;;  %v216_v7 = vsel %vm214_vm0, %v213_v5, %v211_v4 }
  0xbe   : > { %248 = vrot.lane.b32.xlu0 %v215_v6, %s621_s27  ;;  %241 = vrot.lane.b32.xlu1 %v215_v6, %s622_s18 }
  0xc2   : > { %243 = vrot.lane.b32.xlu1 %v216_v7, %s622_s18 }
  0xc6   : > { %250 = vrot.lane.b32.xlu1 %v216_v7, %s621_s27 }
 0x130   : > { %v242_v9 = vpop.permute.xlu1 %241  ;;  %v249_v13 = vpop.permute.xlu0 %248 }
 0x134   : > { %v244_v12 = vpop.permute.xlu1 %243 }
 0x135   : > { %v246_v15 = vsel %vm245_vm1, %v242_v9, %v244_v12  ;;  %v247_v16 = vsel %vm245_vm1, %v244_v12, %v242_v9 }
 0x138   : > { %v251_v14 = vpop.permute.xlu1 %250 }
 0x139   : > { %v253_v17 = vsel %vm252_vm2, %v249_v13, %v251_v14  ;;  %v254_v18 = vsel %vm252_vm2, %v251_v14, %v249_v13 }
 0x13a   : > { %v261_v19 = vsel %vm255_vm3, %v247_v16, %v253_v17  ;;  %v262_v20 = vsel %vm256_vm4, %v246_v15, %v254_v18 }
 0x13b   : > { %263 = vst [vmem:[%s189_s5] sm:$0xff] %v261_v19  ;;  %264 = vst [vmem:[%s189_s5 + $0x8] sm:$0xff] %v262_v20 }
 0x13c   : > { %524 = shalt.err (!%p521_p11)
}
 0x13d   : > { %s525_s3 = scalar_lea.hbm %s781_s23, 256  ;;  %s529_s18 = scalar_lea.hbm %s838_s1, 2048 }
 0x13e   : > { %p526_p3 = scmp.ne.s32.totalorder %s781_s23, %s525_s3  ;;  %p530_p6 = scmp.lt.u32.totalorder %s781_s23, %s838_s1 }
 0x13f   : > { %p531_p8 = scmp.lt.u32.totalorder %s529_s18, %s525_s3  ;;  %p533_p7 = scmp.lt.u32.totalorder %s525_s3, %s781_s23 }
 0x140   : > { %p527_p13 = pnand %p526_p3, %p847_p0 }
 0x141   : > { %p532_p10 = por %p531_p8, %p530_p6 }
 0x142   : > { %p528_p1 = pneg %p527_p13 }
 0x143   : > { %p534_p2 = por %p533_p7, %p532_p10 }
 0x145   : > { %p535_p5 = pnand %p534_p2, %p528_p1 }
 0x147   : > { %538 = shalt.err (!%p535_p5)
}
 0x148   : > { %394 = dma.vmem_to_hbm [thread:$0]  (%p847_p0), %s783_s15, 256, %s781_s23, %s266_s12  }
 0x149 PF: > { %p405_p12 = scmp.ge.s32.totalorder %s617_s14, 2  ;;  %s294_s25 = sand.u32 1, %s585_s6  }
 0x14a   : > { %p848_p4 = scmp.ne.s32.totalorder %s843_s19, 0  ;;  %s295_s5 = scalar_lea.sflag [#allocation4], %s294_s25 }
 0x14c   : > { %p401_p9 = pnand %p405_p12, %p848_p4 }
 0x14e   : > { %580 = dma.done.wait (!%p401_p9), %s295_s5, 256  }
 0x14f   : > { %582 = vsyncadd (!%p401_p9), %s295_s5, 4294967040  ;;  %s17_s14 = sadd.s32 1, %s617_s14   ;;  %s849_s6 = smov %s589_s7 }
 0x150   : > { %p14_p11 = scmp.ge.s32.totalorder %s17_s14, 10   ;;  %s850_s7 = smov %s593_s8 }
 0x151   : > { %s851_s8 = smov %s704_s4  ;;  %s852_s9 = smov %s601_s10 }
 0x152   : > { %s853_s10 = smov %s605_s11  ;;  %s854_s11 = smov %s719_s17 }
 0x153   : > { %s855_s12 = smov %s613_s13  ;;  %s856_s13 = smov %s683_s20 }
 0x154   :  { %16 = sbr.rel (!%p14_p11) target bundleno = 8 (0x8), region = 69 }
 0x15b   :  { %300 = vsyncpa [#allocation3], 1 }
 0x15c   :  { %302 = vsyncpa [#allocation3 + $0x1], 1 }
 0x15d   :  { %303 = vsyncpa [#allocation4], 1 }
 0x15e   :  { %305 = vsyncpa [#allocation4 + $0x1], 1 }

</bundles_post_ra>
